<compile_context>
chip_gen: v7x
topology: tpu7x:2x2x1
jax: 0.10.0
libtpu: 0.0.40
codegen_flags: <defaults>
</compile_context>

<pallas_src>
import numpy as np
import jax
import jax.numpy as jnp
from jax.experimental import pallas as pl
from jax.experimental.pallas import tpu as pltpu


# ----------------------------------------------------------------------------
# Gaussian taps and banded (Toeplitz) operators
# ----------------------------------------------------------------------------

def gaussian_kernel_np(kernel_size: int, sigma: float) -> np.ndarray:
    """Exactly the PyTorch module's 2D Gaussian buffer (float32, normalized)."""
    k = np.fromfunction(
        lambda x, y: 1.0 / (2.0 * np.pi * sigma ** 2)
        * np.exp(
            -(((x - (kernel_size - 1) / 2) ** 2 + (y - (kernel_size - 1) / 2) ** 2)
              / (2.0 * sigma ** 2))
        ),
        (kernel_size, kernel_size),
    )
    return (k / np.sum(k)).astype(np.float32)


def gaussian_1d_np(kernel_size: int, sigma: float) -> np.ndarray:
    """1D factor: outer(g, g) == the normalized 2D kernel (Gaussian is separable)."""
    c = (kernel_size - 1) / 2.0
    g = np.exp(-((np.arange(kernel_size) - c) ** 2) / (2.0 * sigma ** 2))
    return (g / g.sum()).astype(np.float32)


def band_matrix_np(n: int, taps: np.ndarray) -> np.ndarray:
    """Banded Toeplitz matrix M (n x n) with M[i, j] = taps[i - j + p] in the band.

    `row @ M` equals the 1-D 'same' correlation of `row` with `taps` under zero
    padding: the conv padding is folded into the matrix (no padded scratch needed).
    """
    K = int(taps.shape[0])
    p = K // 2
    i = np.arange(n)[:, None]
    j = np.arange(n)[None, :]
    d = i - j
    m = np.where(np.abs(d) <= p, taps[np.clip(d + p, 0, K - 1)], 0.0)
    return m.astype(np.float32)


# ----------------------------------------------------------------------------
# Block-batch selection (VMEM budgeted)
# ----------------------------------------------------------------------------

_IO_BUDGET_BYTES = 20 * 1024 * 1024    # pipelined block I/O + in-kernel f32 values
_VMEM_LIMIT_BYTES = 40 * 1024 * 1024   # raised scoped VMEM limit (ok on v5e/v6e/v7x)
_KRON_MAX_HW = 1024                    # fused (HW x HW) operator up to 32x32 spatial


def _ceil_div(a: int, b: int) -> int:
    return -(-a // b)


def _pick_block_batch(nc: int, per_b_bytes: int, align: int = 1,
                      budget_bytes: int = _IO_BUDGET_BYTES) -> int:
    """Largest block batch B (channel-images per grid step) fitting the budget.

    Returns 0 if even the smallest aligned block does not fit.  When B < nc it is
    a multiple of `align`; an even number of grid steps is preferred best-effort
    (balances v7x's two TensorCores when the 'parallel' axis is sharded across
    them; harmless on single-TC v5e/v6e, where we simply take the max B).
    """
    b = budget_bytes // max(per_b_bytes, 1)
    if b >= nc:
        return nc                      # one grid step; block dim == full array dim
    b = (b // align) * align
    if b < 1:
        return 0
    steps = _ceil_div(nc, b)
    if steps > 1 and steps % 2 == 1:
        b_even = _ceil_div(nc, steps + 1)
        b_even = ((b_even + align - 1) // align) * align
        if 0 < b_even <= b and _ceil_div(nc, b_even) % 2 == 0:
            b = b_even
    return b


# ----------------------------------------------------------------------------
# Kernels (no scratch, no padded staging — everything is MXU matmuls)
# ----------------------------------------------------------------------------

def _kron_kernel(kmat_ref, x_ref, o_ref):
    """Fused blur: one lane-dense matmul against the resident (HW, HW) operator."""
    xf = x_ref[...].astype(jnp.float32)                         # (B, HW)
    y = jnp.dot(xf, kmat_ref[...], preferred_element_type=jnp.float32)
    o_ref[...] = y.astype(o_ref.dtype)


def _separable_kernel(mh_ref, mw_ref, x_ref, o_ref):
    """Separable blur as two banded-Toeplitz batched matmuls on the MXU."""
    B, H, W = x_ref.shape
    xf = x_ref[...].astype(jnp.float32)                         # (B, H, W)
    # Horizontal pass: 'same' zero padding is folded into Mw.
    mw_b = jnp.broadcast_to(mw_ref[...], (B, W, W))
    t = jnp.einsum("bhw,bwv->bhv", xf, mw_b,
                   preferred_element_type=jnp.float32)          # (B, H, W)
    # Vertical pass: banded Mh applied on the H axis, directly on the in-register
    # result (no H-padded scratch roundtrip).
    mh_b = jnp.broadcast_to(mh_ref[...], (B, H, H))
    y = jnp.einsum("bik,bkw->biw", mh_b, t,
                   preferred_element_type=jnp.float32)          # (B, H, W)
    o_ref[...] = y.astype(o_ref.dtype)


# ----------------------------------------------------------------------------
# Wrapper
# ----------------------------------------------------------------------------

class GaussianBlurPallas:
    def __init__(self, channels: int, kernel_size: int, sigma: float):
        assert kernel_size % 2 == 1, "odd kernel_size expected (same-size output)"
        self.channels = channels
        self.kernel_size = kernel_size
        self.sigma = sigma
        self.padding = kernel_size // 2
        # Same deterministic buffer as the PyTorch module (2D, float32) ...
        self.kernel = gaussian_kernel_np(kernel_size, sigma)
        # ... and its exact 1D separable factor used to build the band matrices.
        self.kernel_1d = gaussian_1d_np(kernel_size, sigma)
        self._op_cache = {}

    # -- constant band operators, cached per spatial shape ---------------------
    def _operators(self, H: int, W: int):
        key = (H, W)
        if key not in self._op_cache:
            mh = band_matrix_np(H, self.kernel_1d)          # (H, H), symmetric
            mw = band_matrix_np(W, self.kernel_1d)          # (W, W), symmetric
            kron = None
            if H * W <= _KRON_MAX_HW:
                # Fused operator: Y_flat = X_flat @ kron(Mh^T, Mw).
                # (band matrices are exactly symmetric, .T kept for the derivation)
                kron = np.kron(mh.T, mw).astype(np.float32)  # (H*W, H*W)
            self._op_cache[key] = (
                jnp.asarray(mh), jnp.asarray(mw),
                None if kron is None else jnp.asarray(kron))
        return self._op_cache[key]

    # -- small-spatial path: single lane-dense matmul ---------------------------
    def _call_kron(self, x, kron, N, C, H, W):
        NC, HW = N * C, H * W
        itemsize = x.dtype.itemsize
        per_b = 4 * HW * itemsize + 4 * HW          # double-buffered in+out + f32 value
        B = _pick_block_batch(NC, per_b, align=8)   # second-minor block dim: 8-aligned
        if B == 0:
            return None                             # fall back to separable path
        steps = _ceil_div(NC, B)
        NC_pad = steps * B

        xr = x.reshape(NC, HW)                      # metadata reshape (trailing merge)
        if NC_pad != NC:
            xr = jnp.pad(xr, ((0, NC_pad - NC), (0, 0)))

        out = pl.pallas_call(
            _kron_kernel,
            out_shape=jax.ShapeDtypeStruct((NC_pad, HW), x.dtype),
            grid_spec=pltpu.PrefetchScalarGridSpec(
                num_scalar_prefetch=0,
                grid=(steps,),
                in_specs=[
                    pl.BlockSpec((HW, HW), lambda i: (0, 0)),   # resident fused op
                    pl.BlockSpec((B, HW), lambda i: (i, 0)),    # lane-dense input rows
                ],
                out_specs=pl.BlockSpec((B, HW), lambda i: (i, 0)),
            ),
            compiler_params=pltpu.CompilerParams(
                dimension_semantics=("parallel",),
                vmem_limit_bytes=_VMEM_LIMIT_BYTES,
            ),
        )(kron, xr)

        if NC_pad != NC:
            out = out[:NC]
        return out.reshape(N, C, H, W)

    # -- larger-spatial path: two banded MXU matmuls ----------------------------
    def _call_separable(self, x, mh, mw, N, C, H, W):
        NC = N * C
        itemsize = x.dtype.itemsize
        per_b = (4 * H * W * itemsize          # double-buffered in + out block rows
                 + 2 * H * W * 4               # f32 xf / t values
                 + (H * H + W * W) * 4)        # per-image broadcast of the bands
        B = _pick_block_batch(NC, per_b, align=1)
        if B == 0:
            # TODO(synk): add spatial (H, W) halo tiling for images whose plane
            # working set exceeds the per-step VMEM budget (e.g. 1080p/4K).
            raise NotImplementedError(
                "GaussianBlurPallas: spatial plane too large for a single VMEM "
                "block; spatial halo tiling is not implemented.")
        steps = _ceil_div(NC, B)
        NC_pad = steps * B

        xr = x.reshape(NC, H, W)               # metadata reshape (leading merge)
        if NC_pad != NC:
            xr = jnp.pad(xr, ((0, NC_pad - NC), (0, 0), (0, 0)))

        # NOTE: for production shapes W should be >= 128 for lane-dense stores;
        # small-W shapes are routed to the fused Kronecker path above.
        out = pl.pallas_call(
            _separable_kernel,
            out_shape=jax.ShapeDtypeStruct((NC_pad, H, W), x.dtype),
            grid_spec=pltpu.PrefetchScalarGridSpec(
                num_scalar_prefetch=0,
                grid=(steps,),
                in_specs=[
                    pl.BlockSpec((H, H), lambda i: (0, 0)),     # resident Mh
                    pl.BlockSpec((W, W), lambda i: (0, 0)),     # resident Mw
                    pl.BlockSpec((B, H, W), lambda i: (i, 0, 0)),
                ],
                out_specs=pl.BlockSpec((B, H, W), lambda i: (i, 0, 0)),
            ),
            compiler_params=pltpu.CompilerParams(
                dimension_semantics=("parallel",),
                vmem_limit_bytes=_VMEM_LIMIT_BYTES,
            ),
        )(mh, mw, xr)

        if NC_pad != NC:
            out = out[:NC]
        return out.reshape(N, C, H, W)

    def __call__(self, x: jnp.ndarray, force_path: str | None = None) -> jnp.ndarray:
        # x: (N, C, H, W) NCHW, like PyTorch.
        N, C, H, W = x.shape
        assert C == self.channels
        mh, mw, kron = self._operators(H, W)

        use_kron = (kron is not None) if force_path is None else (force_path == "kron")
        if use_kron:
            if kron is None:
                raise ValueError("kron path requested but H*W exceeds _KRON_MAX_HW")
            out = self._call_kron(x, kron, N, C, H, W)
            if out is not None:
                return out
        return self._call_separable(x, mh, mw, N, C, H, W)


# ----------------------------------------------------------------------------
# Reference (float64 numpy, depthwise 'same' conv with zero padding)
# ----------------------------------------------------------------------------

def _reference_blur_np(x_np: np.ndarray, k2d: np.ndarray) -> np.ndarray:
    N, C, H, W = x_np.shape
    K = k2d.shape[0]
    p = K // 2
    xp = np.pad(x_np.astype(np.float64), ((0, 0), (0, 0), (p, p), (p, p)))
    k = k2d.astype(np.float64)
    out = np.zeros((N, C, H, W), np.float64)
    for a in range(K):
        for b in range(K):
            out += k[a, b] * xp[:, :, a:a + H, b:b + W]
    return out


if __name__ == "__main__":
    N, C, H, W = 2, 4, 16, 16
    kernel_size = 5
    sigma = 1.0

    key = jax.random.PRNGKey(0)
    x = jax.random.normal(key, (N, C, H, W), dtype=jnp.float32)

    blur = GaussianBlurPallas(channels=C, kernel_size=kernel_size, sigma=sigma)
    y_ref = _reference_blur_np(np.asarray(x), blur.kernel)

    # Default path for this shape: fused lane-dense Kronecker matmul.
    y_kron = jax.block_until_ready(blur(x))
    np.testing.assert_allclose(np.asarray(y_kron), y_ref, rtol=1e-3, atol=1e-3)
    assert y_kron.shape == (N, C, H, W)

    # Also exercise the separable two-band-matmul path used for larger spatial shapes.
    y_sep = jax.block_until_ready(blur(x, force_path="separable"))
    np.testing.assert_allclose(np.asarray(y_sep), y_ref, rtol=1e-3, atol=1e-3)

    print("KERNEL_OK")
</pallas_src>

<mosaic_0001>
module attributes {stable_mosaic.version = 11 : i64} {
  func.func @_kron_kernel(%arg0: i32, %arg1: memref<256x256xf32, #tpu.memory_space<vmem>>, %arg2: memref<8x256xf32, #tpu.memory_space<vmem>>, %arg3: memref<8x256xf32, #tpu.memory_space<vmem>>) attributes {dimension_semantics = [#tpu.dimension_semantics<parallel>], iteration_bounds = array<i64: 1>, scalar_prefetch = 0 : i64, scratch_operands = 0 : i64, tpu.core_type = #tpu.core_type<tc>, window_params = [{pipeline_mode = #tpu.pipeline_mode<synchronous>, transform_indices = @transform_0, window_bounds = array<i64: 256, 256>}, {transform_indices = @transform_1, window_bounds = array<i64: 8, 256>}, {transform_indices = @transform_2, window_bounds = array<i64: 8, 256>}]} {
    %c0 = arith.constant 0 : index
    %c0_0 = arith.constant 0 : index
    %0 = vector.load %arg2[%c0, %c0_0] : memref<8x256xf32, #tpu.memory_space<vmem>>, vector<8x256xf32>
    %c0_1 = arith.constant 0 : index
    %c0_2 = arith.constant 0 : index
    %1 = vector.load %arg1[%c0_1, %c0_2] : memref<256x256xf32, #tpu.memory_space<vmem>>, vector<256x256xf32>
    %cst = arith.constant dense<0.000000e+00> : vector<8x256xf32>
    %2 = tpu.matmul %0, %1, %cst {dimension_numbers = #tpu.dot_dimension_numbers<[1], [0], [0], [1], [0, 0, 1, 1], [], []>} : vector<8x256xf32>, vector<256x256xf32>, vector<8x256xf32> -> vector<8x256xf32>
    %c0_3 = arith.constant 0 : index
    %c0_4 = arith.constant 0 : index
    %3 = vector.load %arg3[%c0_3, %c0_4] : memref<8x256xf32, #tpu.memory_space<vmem>>, vector<8x256xf32>
    tpu.vector_store %arg3[%c0_3, %c0_4], %2 {strides = array<i32>} : memref<8x256xf32, #tpu.memory_space<vmem>>, vector<8x256xf32>,
    return
  }
  func.func @transform_0(%arg0: i32) -> (i32, i32) {
    %c0_i32 = arith.constant 0 : i32
    %c0_i32_0 = arith.constant 0 : i32
    %c0_i32_1 = arith.constant 0 : i32
    return %c0_i32, %c0_i32_0 : i32, i32
  }
  func.func @transform_1(%arg0: i32) -> (i32, i32) {
    %c0_i32 = arith.constant 0 : i32
    %c0_i32_0 = arith.constant 0 : i32
    return %arg0, %c0_i32 : i32, i32
  }
  func.func @transform_2(%arg0: i32) -> (i32, i32) {
    %c0_i32 = arith.constant 0 : i32
    %c0_i32_0 = arith.constant 0 : i32
    return %arg0, %c0_i32 : i32, i32
  }
}

</mosaic_0001>

<bundles_post_ra>
// kernel: tpu_custom_call.1
= control target key start
LH: loop header
LB: loop body
LE: loop exit
PB: predicated region body
PF: predicated region fallthrough
CT: control target
= control target key end

     0   :  { %7 = vsyncpa [#allocation3], 0  ;;  %s390_s0 = inlined_call_operand.hbm [shape: f32[256,256], index: 0, kind: input, shape index: {}]   ;;  %s391_s1 = inlined_call_operand.hbm [shape: f32[8,256], index: 1, kind: input, shape index: {}]   ;;  %s392_s2 = inlined_call_operand.hbm [shape: f32[8,256], index: 2, kind: output, shape index: {}]  }
   0x1   :  { %8 = vsyncpa [#allocation6], 0 }
   0x2   :  { %9 = vsyncpa [#allocation4], 0  ;;  %s334_s9 = smov [#allocation2]   ;;  %s262_s13 = scalar_lea.hbm %s390_s0, 8192 }
   0x3   :  { %s15_s10 = sshll.u32 %s334_s9, 4  ;;  %p263_p0 = scmp.ne.s32.totalorder %s390_s0, %s262_s13  ;;  %s16_s10 = int_to_ptr.vmem [resolvable:$true] %s15_s10 }
   0x4   :  { %p266_p1 = scmp.lt.u32.totalorder %s262_s13, %s390_s0 }
   0x6   :  { %p268_p2 = pnand %p266_p1, %p263_p0 }
   0x8   :  { %271 = shalt.err (!%p268_p2)
}
   0x9   :  { %s272_s18 = scalar_lea.vmem %s16_s10, 8192  ;;  %p277_p4 = scmp.lt.s32.totalorder %s16_s10, %s16_s10 }
   0xa   :  { %p273_p3 = scmp.ne.s32.totalorder %s16_s10, %s272_s18  ;;  %p278_p5 = scmp.lt.s32.totalorder %s272_s18, %s272_s18 }
   0xc   :  { %p279_p6 = por %p278_p5, %p277_p4 }
   0xe   :  { %p280_p7 = pnand %p279_p6, %p273_p3 }
  0x10   :  { %283 = shalt.err (!%p280_p7)
}
  0x11   :  { %s335_s19 = smov 256   ;;  %s336_s20 = smov 16  }
  0x12   :  { %21 = dma.hbm_to_vmem [thread:$0]  %s390_s0, 8192, %s16_s10, [#allocation3], %s335_s19, %s335_s19, %s336_s20  }
  0x13   :  { %s337_s23 = smov [#allocation5]   ;;  %s284_s27 = scalar_lea.hbm %s391_s1, 256 }
  0x14   :  { %s28_s24 = sshll.u32 %s337_s23, 4  ;;  %p285_p8 = scmp.ne.s32.totalorder %s391_s1, %s284_s27  ;;  %s29_s24 = int_to_ptr.vmem [resolvable:$true] %s28_s24 }
  0x15   :  { %p288_p9 = scmp.lt.u32.totalorder %s284_s27, %s391_s1 }
  0x17   :  { %p290_p10 = pnand %p288_p9, %p285_p8 }
  0x19   :  { %293 = shalt.err (!%p290_p10)
}
  0x1a   :  { %s294_s4 = scalar_lea.vmem %s29_s24, 256  ;;  %p299_p12 = scmp.lt.s32.totalorder %s29_s24, %s29_s24 }
  0x1b   :  { %p295_p11 = scmp.ne.s32.totalorder %s29_s24, %s294_s4  ;;  %p300_p13 = scmp.lt.s32.totalorder %s294_s4, %s294_s4 }
  0x1d   :  { %p301_p0 = por %p300_p13, %p299_p12 }
  0x1f   :  { %p302_p1 = pnand %p301_p0, %p295_p11 }
  0x21   :  { %305 = shalt.err (!%p302_p1)
}
  0x22   :  { %31 = dma.hbm_to_vmem [thread:$0]  %s391_s1, 256, %s29_s24, [#allocation6]  }
  0x23   :  { %328 = dma.done.wait [#allocation3], 8192  }
  0x24   :  { %329 = vsyncadd [#allocation3], 4294959104 }
  0x25   :  { %330 = dma.done.wait [#allocation6], 256  }
  0x26   :  { %331 = vsyncadd [#allocation6], 4294967040  ;;  %v41_v0 = vld [vmem:[#allocation2 + $0x8] sm:$0xff]  ;;  %v43_v1 = vld [vmem:[#allocation2 + $0x18] sm:$0xff]  ;;  %s338_s1 = smov [#allocation7]  }
  0x27   :  { %v40_v2 = vld [vmem:[#allocation2] sm:$0xff]  ;;  %v193_v3 = vpack.c.bf16 %v43_v1, %v41_v0  ;;  %v42_v4 = vld [vmem:[#allocation2 + $0x10] sm:$0xff]  ;;  %v45_v5 = vld [vmem:[#allocation2 + $0x28] sm:$0xff]  ;;  %s183_s6 = sshll.u32 %s338_s1, 4  ;;  %s184_s6 = int_to_ptr.vmem [resolvable:$true] %s183_s6 }
  0x28   :  { %v47_v6 = vld [vmem:[#allocation2 + $0x38] sm:$0xff]  ;;  %v195_v7 = vpack.c.bf16 %v42_v4, %v40_v2  ;;  %v44_v9 = vld [vmem:[#allocation2 + $0x20] sm:$0xff]  ;;  %v46_v10 = vld [vmem:[#allocation2 + $0x30] sm:$0xff]  ;;  %s306_s7 = scalar_lea.vmem %s184_s6, 256  ;;  %p311_p3 = scmp.lt.s32.totalorder %s184_s6, %s184_s6 }
  0x29   :  { %v197_v8 = vpack.c.bf16 %v47_v6, %v45_v5  ;;  %v49_v11 = vld [vmem:[#allocation2 + $0x48] sm:$0xff]  ;;  %194 = vmatprep.subr.bf16.mxu0 %v193_v3  ;;  %v51_v12 = vld [vmem:[#allocation2 + $0x58] sm:$0xff]  ;;  %v199_v13 = vpack.c.bf16 %v46_v10, %v44_v9  ;;  %v48_v15 = vld [vmem:[#allocation2 + $0x40] sm:$0xff]  ;;  %p307_p2 = scmp.ne.s32.totalorder %s184_s6, %s306_s7  ;;  %p312_p4 = scmp.lt.s32.totalorder %s306_s7, %s306_s7 }
  0x2a   :  { %196 = vmatpush1.bf16.msra.mxu0 %v195_v7  ;;  %v201_v14 = vpack.c.bf16 %v51_v12, %v49_v11  ;;  %v50_v16 = vld [vmem:[#allocation2 + $0x50] sm:$0xff]  ;;  %v53_v17 = vld [vmem:[#allocation2 + $0x68] sm:$0xff]  ;;  %v55_v18 = vld [vmem:[#allocation2 + $0x78] sm:$0xff] }
  0x2b   :  { %198 = vmatprep.subr.bf16.mxu0 %v197_v8  ;;  %v203_v19 = vpack.c.bf16 %v50_v16, %v48_v15  ;;  %v205_v20 = vpack.c.bf16 %v55_v18, %v53_v17  ;;  %v52_v21 = vld [vmem:[#allocation2 + $0x60] sm:$0xff]  ;;  %v54_v22 = vld [vmem:[#allocation2 + $0x70] sm:$0xff]  ;;  %v57_v23 = vld [vmem:[#allocation2 + $0x88] sm:$0xff]  ;;  %p313_p5 = por %p312_p4, %p311_p3 }
  0x2c   :  { %v59_v24 = vld [vmem:[#allocation2 + $0x98] sm:$0xff]  ;;  %v207_v25 = vpack.c.bf16 %v54_v22, %v52_v21  ;;  %v56_v27 = vld [vmem:[#allocation2 + $0x80] sm:$0xff]  ;;  %v58_v28 = vld [vmem:[#allocation2 + $0x90] sm:$0xff] }
  0x2d   :  { %v209_v26 = vpack.c.bf16 %v59_v24, %v57_v23  ;;  %v61_v29 = vld [vmem:[#allocation2 + $0xa8] sm:$0xff]  ;;  %v63_v30 = vld [vmem:[#allocation2 + $0xb8] sm:$0xff]  ;;  %v211_v31 = vpack.c.bf16 %v58_v28, %v56_v27  ;;  %v60_v33 = vld [vmem:[#allocation2 + $0xa0] sm:$0xff]  ;;  %p314_p6 = pnand %p313_p5, %p307_p2 }
  0x2e   :  { %200 = vmatpush1.bf16.msra.mxu0 %v199_v13  ;;  %v213_v32 = vpack.c.bf16 %v63_v30, %v61_v29  ;;  %v62_v34 = vld [vmem:[#allocation2 + $0xb0] sm:$0xff]  ;;  %v65_v35 = vld [vmem:[#allocation2 + $0xc8] sm:$0xff]  ;;  %v67_v36 = vld [vmem:[#allocation2 + $0xd8] sm:$0xff] }
  0x2f   :  { %202 = vmatprep.subr.bf16.mxu0 %v201_v14  ;;  %v215_v37 = vpack.c.bf16 %v62_v34, %v60_v33  ;;  %v217_v38 = vpack.c.bf16 %v67_v36, %v65_v35  ;;  %v64_v39 = vld [vmem:[#allocation2 + $0xc0] sm:$0xff]  ;;  %v66_v40 = vld [vmem:[#allocation2 + $0xd0] sm:$0xff]  ;;  %v39_v41 = vld [vmem:[#allocation5 + $0x8] sm:$0xff] }
  0x30   :  { %v69_v42 = vld [vmem:[#allocation2 + $0xe8] sm:$0xff]  ;;  %v71_v43 = vld [vmem:[#allocation2 + $0xf8] sm:$0xff]  ;;  %168 = vmatprep.mubr.f32.mxu0 %v39_v41  ;;  %v219_v44 = vpack.c.bf16 %v66_v40, %v64_v39  ;;  %v68_v46 = vld [vmem:[#allocation2 + $0xe0] sm:$0xff] }
  0x31   :  { %v221_v45 = vpack.c.bf16 %v71_v43, %v69_v42  ;;  %v70_v47 = vld [vmem:[#allocation2 + $0xf0] sm:$0xff]  ;;  %v73_v48 = vld [vmem:[#allocation2 + $0x108] sm:$0xff]  ;;  %v75_v49 = vld [vmem:[#allocation2 + $0x118] sm:$0xff] }
  0x32   :  { %204 = vmatpush1.bf16.msra.mxu0 %v203_v19  ;;  %v223_v50 = vpack.c.bf16 %v70_v47, %v68_v46  ;;  %v225_v51 = vpack.c.bf16 %v75_v49, %v73_v48  ;;  %v72_v52 = vld [vmem:[#allocation2 + $0x100] sm:$0xff]  ;;  %v74_v53 = vld [vmem:[#allocation2 + $0x110] sm:$0xff]  ;;  %v77_v54 = vld [vmem:[#allocation2 + $0x128] sm:$0xff] }
  0x33   :  { %206 = vmatprep.subr.bf16.mxu0 %v205_v20  ;;  %v79_v55 = vld [vmem:[#allocation2 + $0x138] sm:$0xff]  ;;  %v227_v56 = vpack.c.bf16 %v74_v53, %v72_v52  ;;  %v76_v58 = vld [vmem:[#allocation2 + $0x120] sm:$0xff]  ;;  %v78_v59 = vld [vmem:[#allocation2 + $0x130] sm:$0xff] }
  0x34   :  { %v229_v57 = vpack.c.bf16 %v79_v55, %v77_v54  ;;  %v81_v60 = vld [vmem:[#allocation2 + $0x148] sm:$0xff]  ;;  %v83_v61 = vld [vmem:[#allocation2 + $0x158] sm:$0xff]  ;;  %v231_v62 = vpack.c.bf16 %v78_v59, %v76_v58  ;;  %v80_v0 = vld [vmem:[#allocation2 + $0x140] sm:$0xff] }
  0x35   :  { %v233_v63 = vpack.c.bf16 %v83_v61, %v81_v60  ;;  %v82_v1 = vld [vmem:[#allocation2 + $0x150] sm:$0xff]  ;;  %v85_v2 = vld [vmem:[#allocation2 + $0x168] sm:$0xff]  ;;  %v87_v3 = vld [vmem:[#allocation2 + $0x178] sm:$0xff] }
  0x36   :  { %208 = vmatpush1.bf16.msra.mxu0 %v207_v25  ;;  %v235_v4 = vpack.c.bf16 %v82_v1, %v80_v0  ;;  %v237_v5 = vpack.c.bf16 %v87_v3, %v85_v2  ;;  %v84_v6 = vld [vmem:[#allocation2 + $0x160] sm:$0xff]  ;;  %v86_v7 = vld [vmem:[#allocation2 + $0x170] sm:$0xff]  ;;  %v89_v8 = vld [vmem:[#allocation2 + $0x188] sm:$0xff] }
  0x37   :  { %210 = vmatprep.subr.bf16.mxu0 %v209_v26  ;;  %v91_v9 = vld [vmem:[#allocation2 + $0x198] sm:$0xff]  ;;  %v239_v10 = vpack.c.bf16 %v86_v7, %v84_v6  ;;  %v88_v12 = vld [vmem:[#allocation2 + $0x180] sm:$0xff]  ;;  %v90_v13 = vld [vmem:[#allocation2 + $0x190] sm:$0xff] }
  0x38   :  { %v241_v11 = vpack.c.bf16 %v91_v9, %v89_v8  ;;  %v93_v14 = vld [vmem:[#allocation2 + $0x1a8] sm:$0xff]  ;;  %v95_v15 = vld [vmem:[#allocation2 + $0x1b8] sm:$0xff]  ;;  %v243_v16 = vpack.c.bf16 %v90_v13, %v88_v12  ;;  %v92_v18 = vld [vmem:[#allocation2 + $0x1a0] sm:$0xff] }
  0x39   :  { %v245_v17 = vpack.c.bf16 %v95_v15, %v93_v14  ;;  %v94_v19 = vld [vmem:[#allocation2 + $0x1b0] sm:$0xff]  ;;  %v97_v20 = vld [vmem:[#allocation2 + $0x1c8] sm:$0xff]  ;;  %v99_v21 = vld [vmem:[#allocation2 + $0x1d8] sm:$0xff] }
  0x3a   :  { %212 = vmatpush1.bf16.msra.mxu0 %v211_v31  ;;  %v247_v22 = vpack.c.bf16 %v94_v19, %v92_v18  ;;  %v249_v23 = vpack.c.bf16 %v99_v21, %v97_v20  ;;  %v96_v24 = vld [vmem:[#allocation2 + $0x1c0] sm:$0xff]  ;;  %v98_v25 = vld [vmem:[#allocation2 + $0x1d0] sm:$0xff]  ;;  %v101_v26 = vld [vmem:[#allocation2 + $0x1e8] sm:$0xff] }
  0x3b   :  { %214 = vmatprep.subr.bf16.mxu0 %v213_v32  ;;  %v103_v27 = vld [vmem:[#allocation2 + $0x1f8] sm:$0xff]  ;;  %v251_v28 = vpack.c.bf16 %v98_v25, %v96_v24  ;;  %v100_v30 = vld [vmem:[#allocation2 + $0x1e0] sm:$0xff]  ;;  %v102_v31 = vld [vmem:[#allocation2 + $0x1f0] sm:$0xff] }
  0x3c   :  { %v253_v29 = vpack.c.bf16 %v103_v27, %v101_v26  ;;  %v255_v32 = vpack.c.bf16 %v102_v31, %v100_v30  ;;  %v38_v33 = vld [vmem:[#allocation5] sm:$0xff] }
  0x3e   :  { %216 = vmatpush1.bf16.msra.mxu0 %v215_v37 }
  0x3f   :  { %218 = vmatprep.subr.bf16.mxu0 %v217_v38 }
  0x42   :  { %220 = vmatpush1.bf16.msra.mxu0 %v219_v44 }
  0x43   :  { %222 = vmatprep.subr.bf16.mxu0 %v221_v45 }
  0x46   :  { %224 = vmatpush1.bf16.msra.mxu0 %v223_v50 }
  0x47   :  { %226 = vmatprep.subr.bf16.mxu0 %v225_v51 }
  0x4a   :  { %228 = vmatpush1.bf16.msra.mxu0 %v227_v56 }
  0x4b   :  { %230 = vmatprep.subr.bf16.mxu0 %v229_v57 }
  0x4e   :  { %232 = vmatpush1.bf16.msra.mxu0 %v231_v62 }
  0x4f   :  { %234 = vmatprep.subr.bf16.mxu0 %v233_v63 }
  0x52   :  { %236 = vmatpush1.bf16.msra.mxu0 %v235_v4 }
  0x53   :  { %238 = vmatprep.subr.bf16.mxu0 %v237_v5 }
  0x56   :  { %240 = vmatpush1.bf16.msra.mxu0 %v239_v10 }
  0x57   :  { %242 = vmatprep.subr.bf16.mxu0 %v241_v11 }
  0x5a   :  { %244 = vmatpush1.bf16.msra.mxu0 %v243_v16 }
  0x5b   :  { %246 = vmatprep.subr.bf16.mxu0 %v245_v17 }
  0x5e   :  { %248 = vmatpush1.bf16.msra.mxu0 %v247_v22 }
  0x5f   :  { %250 = vmatprep.subr.bf16.mxu0 %v249_v23 }
  0x62   :  { %252 = vmatpush1.bf16.msra.mxu0 %v251_v28 }
  0x63   :  { %254 = vmatprep.subr.bf16.mxu0 %v253_v29 }
  0x66   :  { %256 = vmatpush1.bf16.msra.mxu0 %v255_v32 }
  0x69   :  { %169 = vmatmul.mubr.f32.vlgmr.msra.gmra.mrb[0].mxu0 %v38_v33 }
 0x13c   :  { %v170_v34 = vpop.f32.mrb[0].mxu0 }
 0x13d   :  { %175 = vst [vmem:[#allocation7] sm:$0xff] %v170_v34  ;;  %v172_v35 = vpop.f32.mrb[1].mxu0 }
 0x13e   :  { %176 = vst [vmem:[#allocation7 + $0x8] sm:$0xff] %v172_v35 }
 0x13f   :  { %317 = shalt.err (!%p314_p6)
}
 0x140   :  { %s318_s10 = scalar_lea.hbm %s392_s2, 256 }
 0x141   :  { %p319_p7 = scmp.ne.s32.totalorder %s392_s2, %s318_s10  ;;  %p322_p8 = scmp.lt.u32.totalorder %s318_s10, %s392_s2 }
 0x143   :  { %p324_p9 = pnand %p322_p8, %p319_p7 }
 0x145   :  { %327 = shalt.err (!%p324_p9)
}
 0x146   :  { %186 = dma.vmem_to_hbm [thread:$0]  %s184_s6, 256, %s392_s2, [#allocation4]  }
 0x147   :  { %332 = dma.done.wait [#allocation4], 256  }
 0x148   :  { %333 = vsyncadd [#allocation4], 4294967040 }
 0x149   :  { %190 = vsyncpa [#allocation3], 1 }
 0x14a   :  { %191 = vsyncpa [#allocation6], 1 }
 0x14b   :  { %192 = vsyncpa [#allocation4], 1 }

</bundles_post_ra>
